<compile_context>
chip_gen: v7x
topology: tpu7x:2x2x1
jax: 0.10.0
libtpu: 0.0.40
codegen_flags: <defaults>
</compile_context>

<pallas_src>
import functools
import numpy as np
import jax
import jax.numpy as jnp
from jax.experimental import pallas as pl
from jax.experimental.pallas import tpu as pltpu


# ----------------------------- Pallas kernels -----------------------------
def _pixel_norm_spatial_kernel(x_ref, o_ref, *, inv_c, eps):
    # x_ref: [P, C, TL] — normalize each (p, spatial) feature vector over C.
    x = x_ref[...].astype(jnp.float32)
    ssq = jnp.sum(x * x, axis=1, keepdims=True)        # [P, 1, TL]  (sublane/XLU reduce)
    scale = jax.lax.rsqrt(ssq * inv_c + eps)           # EUP
    o_ref[...] = (x * scale).astype(o_ref.dtype)


def _pixel_norm_vector_kernel(x_ref, o_ref, *, inv_c, eps):
    # x_ref: [P, C] — normalize each row over C (lane reduce).
    x = x_ref[...].astype(jnp.float32)
    ssq = jnp.sum(x * x, axis=-1, keepdims=True)       # [P, 1]
    scale = jax.lax.rsqrt(ssq * inv_c + eps)
    o_ref[...] = (x * scale).astype(o_ref.dtype)


# ----------------------------- wrapper -----------------------------
def _choose_l_tile(l, max_tile=4096):
    """Pick a lane-dense tile of the trailing (spatial) axis that divides l."""
    if l <= max_tile:
        return l
    for t in range(max_tile, 127, -128):               # multiples of 128
        if l % t == 0:
            return t
    return l                                           # fall back: single full block


def pixel_norm(x, dim=1, eps=1e-8):
    """PixelNormLayer.forward(x): pixel-wise feature-vector normalization over `dim`."""
    dim = dim % x.ndim
    shape = x.shape
    p = int(np.prod(shape[:dim])) if dim > 0 else 1
    c = int(shape[dim])
    l = int(np.prod(shape[dim + 1:])) if dim + 1 < x.ndim else 1
    inv_c = 1.0 / float(c)

    if l == 1:
        # Latent-vector case: reduce over the lane axis of one [P, C] block.
        # TODO(synk): tile over P (multiples of 8 sublanes) if batch ever gets large.
        x2 = x.reshape(p, c)
        out = pl.pallas_call(
            functools.partial(_pixel_norm_vector_kernel, inv_c=inv_c, eps=eps),
            out_shape=jax.ShapeDtypeStruct((p, c), x.dtype),
            grid=(1,),
            in_specs=[pl.BlockSpec((p, c), lambda i: (0, 0))],
            out_specs=pl.BlockSpec((p, c), lambda i: (0, 0)),
        )(x2)
        return out.reshape(shape)

    # Feature-map case: spatial axis on lanes, channel reduction on sublanes.
    x3 = x.reshape(p, c, l)
    tl = _choose_l_tile(l)
    grid = (l // tl,)
    out = pl.pallas_call(
        functools.partial(_pixel_norm_spatial_kernel, inv_c=inv_c, eps=eps),
        out_shape=jax.ShapeDtypeStruct((p, c, l), x.dtype),
        grid=grid,
        in_specs=[pl.BlockSpec((p, c, tl), lambda i: (0, 0, i))],
        out_specs=pl.BlockSpec((p, c, tl), lambda i: (0, 0, i)),
        compiler_params=pltpu.CompilerParams(
            dimension_semantics=("parallel",)),        # spatial tiles are independent
    )(x3)
    return out.reshape(shape)


# ----------------------------- pure-JAX reference -----------------------------
def reference_pixel_norm(x, dim, eps):
    scale = jax.lax.rsqrt(jnp.mean(jnp.square(x), axis=dim, keepdims=True) + eps)
    return x * scale


# ----------------------------- main -----------------------------
if __name__ == "__main__":
    key = jax.random.PRNGKey(0)
    k1, k2 = jax.random.split(key)

    # Feature-map input (NCHW, dim=1): batch=2, channels=4, spatial=16x16.
    x_fmap = jax.random.normal(k1, (2, 4, 16, 16), dtype=jnp.float32)
    out_fmap = jax.jit(lambda a: pixel_norm(a, dim=1, eps=1e-8))(x_fmap)

    # Latent-vector input (mapping-network z, dim=1): batch=2, hidden=32.
    x_lat = jax.random.normal(k2, (2, 32), dtype=jnp.float32)
    out_lat = jax.jit(lambda a: pixel_norm(a, dim=1, eps=1e-8))(x_lat)

    jax.block_until_ready((out_fmap, out_lat))

    ref_fmap = reference_pixel_norm(x_fmap, 1, 1e-8)
    ref_lat = reference_pixel_norm(x_lat, 1, 1e-8)
    assert out_fmap.shape == x_fmap.shape and out_fmap.dtype == x_fmap.dtype
    assert out_lat.shape == x_lat.shape and out_lat.dtype == x_lat.dtype
    assert np.allclose(np.asarray(out_fmap), np.asarray(ref_fmap), rtol=1e-5, atol=1e-5)
    assert np.allclose(np.asarray(out_lat), np.asarray(ref_lat), rtol=1e-5, atol=1e-5)

    print("KERNEL_OK")
</pallas_src>

<mosaic_0001>
module attributes {stable_mosaic.version = 11 : i64} {
  func.func @_pixel_norm_spatial_kernel(%arg0: i32, %arg1: memref<2x4x256xf32, #tpu.memory_space<vmem>>, %arg2: memref<2x4x256xf32, #tpu.memory_space<vmem>>) attributes {dimension_semantics = [#tpu.dimension_semantics<parallel>], iteration_bounds = array<i64: 1>, scalar_prefetch = 0 : i64, scratch_operands = 0 : i64, tpu.core_type = #tpu.core_type<tc>, window_params = [{transform_indices = @transform_0, window_bounds = array<i64: 2, 4, 256>}, {transform_indices = @transform_1, window_bounds = array<i64: 2, 4, 256>}]} {
    %c0 = arith.constant 0 : index
    %c0_0 = arith.constant 0 : index
    %c0_1 = arith.constant 0 : index
    %0 = vector.load %arg1[%c0, %c0_0, %c0_1] : memref<2x4x256xf32, #tpu.memory_space<vmem>>, vector<2x4x256xf32>
    %1 = arith.mulf %0, %0 : vector<2x4x256xf32>
    %cst = arith.constant dense<0.000000e+00> : vector<2x256xf32>
    %2 = vector.multi_reduction <add>, %1, %cst [1] : vector<2x4x256xf32> to vector<2x256xf32>
    %3 = vector.shape_cast %2 : vector<2x256xf32> to vector<2x1x256xf32>
    %cst_2 = arith.constant 2.500000e-01 : f32
    %4 = vector.broadcast %cst_2 : f32 to vector<2x1x256xf32>
    %5 = arith.mulf %3, %4 : vector<2x1x256xf32>
    %cst_3 = arith.constant 9.99999993E-9 : f32
    %6 = vector.broadcast %cst_3 : f32 to vector<2x1x256xf32>
    %7 = arith.addf %5, %6 : vector<2x1x256xf32>
    %8 = math.rsqrt %7 : vector<2x1x256xf32>
    %9 = vector.broadcast %8 : vector<2x1x256xf32> to vector<2x4x256xf32>
    %10 = arith.mulf %0, %9 : vector<2x4x256xf32>
    %c0_4 = arith.constant 0 : index
    %c0_5 = arith.constant 0 : index
    %c0_6 = arith.constant 0 : index
    %11 = vector.load %arg2[%c0_4, %c0_5, %c0_6] : memref<2x4x256xf32, #tpu.memory_space<vmem>>, vector<2x4x256xf32>
    tpu.vector_store %arg2[%c0_4, %c0_5, %c0_6], %10 {strides = array<i32>} : memref<2x4x256xf32, #tpu.memory_space<vmem>>, vector<2x4x256xf32>,
    return
  }
  func.func @transform_0(%arg0: i32) -> (i32, i32, i32) {
    %c0_i32 = arith.constant 0 : i32
    %c0_i32_0 = arith.constant 0 : i32
    %c0_i32_1 = arith.constant 0 : i32
    return %c0_i32, %c0_i32_0, %arg0 : i32, i32, i32
  }
  func.func @transform_1(%arg0: i32) -> (i32, i32, i32) {
    %c0_i32 = arith.constant 0 : i32
    %c0_i32_0 = arith.constant 0 : i32
    %c0_i32_1 = arith.constant 0 : i32
    return %c0_i32, %c0_i32_0, %arg0 : i32, i32, i32
  }
}

</mosaic_0001>

<bundles_post_ra>
// kernel: _lambda_.1
= control target key start
LH: loop header
LB: loop body
LE: loop exit
PB: predicated region body
PF: predicated region fallthrough
CT: control target
= control target key end

     0   :  { %vm18_vm0 = vcmask 1043456   ;;  %s105_s0 = inlined_call_operand.vmem [shape: f32[2,4,256], index: 0, kind: input, shape index: {}]   ;;  %s106_s1 = inlined_call_operand.vmem [shape: f32[2,4,256], index: 1, kind: output, shape index: {}]  }
   0x1   :  { %v8_v0 = vld [vmem:[%s105_s0] sm:$0xff]  ;;  %v9_v1 = vld [vmem:[%s105_s0 + $0x8] sm:$0xff] }
   0x2   :  { %v10_v2 = vmul.f32 %v8_v0, %v8_v0  ;;  %v11_v3 = vmul.f32 %v9_v1, %v9_v1 }
   0x4   :  { %v14_v4 = vcombine.high %v10_v2, %v10_v2  ;;  %v19_v5 = vsel %vm18_vm0, %v10_v2, 0.0  ;;  %v15_v6 = vcombine.high %v11_v3, %v11_v3  ;;  %v33_v7 = vsel %vm18_vm0, %v11_v3, 0.0 }
   0x5   :  { %v20_v8 = vrot.slane %v19_v5, 4  ;;  %v34_v9 = vrot.slane %v33_v7, 4 }
   0x6   :  { %v26_v10 = vsel %vm18_vm0, %v14_v4, 0.0  ;;  %v40_v11 = vsel %vm18_vm0, %v15_v6, 0.0 }
   0x7   :  { %v21_v12 = vadd.f32 %v20_v8, %v19_v5  ;;  %v27_v13 = vrot.slane %v26_v10, 4  ;;  %v35_v14 = vadd.f32 %v34_v9, %v33_v7  ;;  %v41_v15 = vrot.slane %v40_v11, 4 }
   0x9   :  { %v22_v16 = vrot.slane %v21_v12, 2  ;;  %v28_v17 = vadd.f32 %v27_v13, %v26_v10  ;;  %v36_v18 = vrot.slane %v35_v14, 2  ;;  %v42_v19 = vadd.f32 %v41_v15, %v40_v11 }
   0xb   :  { %v23_v20 = vadd.f32 %v22_v16, %v21_v12  ;;  %v29_v21 = vrot.slane %v28_v17, 2  ;;  %v37_v22 = vadd.f32 %v36_v18, %v35_v14  ;;  %v43_v23 = vrot.slane %v42_v19, 2 }
   0xd   :  { %v24_v24 = vrot.slane %v23_v20, 1  ;;  %v30_v25 = vadd.f32 %v29_v21, %v28_v17  ;;  %v38_v26 = vrot.slane %v37_v22, 1  ;;  %v44_v27 = vadd.f32 %v43_v23, %v42_v19 }
   0xf   :  { %v25_v28 = vadd.f32 %v24_v24, %v23_v20  ;;  %v31_v29 = vrot.slane %v30_v25, 1  ;;  %v39_v30 = vadd.f32 %v38_v26, %v37_v22  ;;  %v45_v31 = vrot.slane %v44_v27, 1 }
  0x11   :  { %v32_v32 = vadd.f32 %v31_v29, %v30_v25  ;;  %v47_v33 = vmul.f32 0.25, %v25_v28  ;;  %v46_v34 = vadd.f32 %v45_v31, %v44_v27  ;;  %v49_v35 = vmul.f32 0.25, %v39_v30 }
  0x13   :  { %v48_v36 = vmul.f32 0.25, %v32_v32  ;;  %v51_v37 = vadd.f32 1e-08, %v47_v33  ;;  %v50_v38 = vmul.f32 0.25, %v46_v34  ;;  %v53_v39 = vadd.f32 1e-08, %v49_v35 }
  0x15   :  { %v52_v40 = vadd.f32 1e-08, %v48_v36  ;;  %75 = vrsqrt.f32 %v51_v37  ;;  %v54_v41 = vadd.f32 1e-08, %v50_v38 }
  0x16   :  { %77 = vrsqrt.f32 %v53_v39 }
  0x17   :  { %79 = vrsqrt.f32 %v52_v40 }
  0x18   :  { %81 = vrsqrt.f32 %v54_v41 }
  0x1f   :  { %v76_v42 = vpop.eup %75 }
  0x20   :  { %v78_v43 = vpop.eup %77 }
  0x21   :  { %v80_v44 = vpop.eup %79 }
  0x22   :  { %v82_v45 = vpop.eup %81  ;;  %v63_v46 = vcombine.low %v76_v42, %v80_v44 }
  0x23   :  { %v64_v47 = vcombine.low %v78_v43, %v82_v45 }
  0x24   :  { %v67_v48 = vmul.f32 %v63_v46, %v8_v0 }
  0x25   :  { %v68_v49 = vmul.f32 %v64_v47, %v9_v1 }
  0x26   :  { %69 = vst [vmem:[%s106_s1] sm:$0xff] %v67_v48 }
  0x27   :  { %70 = vst [vmem:[%s106_s1 + $0x8] sm:$0xff] %v68_v49 }

</bundles_post_ra>
